<compile_context>
chip_gen: v7x
topology: tpu7x:2x2x1
jax: 0.10.0
libtpu: 0.0.40
codegen_flags: <defaults>
</compile_context>

<pallas_src>
import functools
import math

import jax
import jax.numpy as jnp
from jax import lax
from jax.experimental import pallas as pl
from jax.experimental.pallas import tpu as pltpu


def _icloss_kernel(w_ref, f_ref, part_ref, *, batch):
    """One batch tile: per-row IC via single-pass stats, masked row-sum."""
    f = f_ref[...].astype(jnp.float32)            # (TB, N)
    tb, n = f.shape
    w = w_ref[...]                                # (1, N) centered ramp, Σw = 0

    # Closed-form statistics of sort = [N, N-1, ..., 1] (torch.arange(N,0,-1)):
    #   mean = (N+1)/2, unbiased std = sqrt(N*(N+1)/12), Σ(sort - mean) = 0.
    s_std = jnp.float32(math.sqrt(n * (n + 1) / 12.0))
    inv_n = jnp.float32(1.0 / n)
    # torch.std is unbiased (ddof=1); N==1 gives NaN in PyTorch — keep that.
    inv_nm1 = jnp.float32((1.0 / (n - 1)) if n > 1 else float("nan"))

    # single-pass sufficient statistics (lane-axis reductions)
    s1 = jnp.sum(f, axis=1, keepdims=True)        # Σf        (TB,1)
    s2 = jnp.sum(f * f, axis=1, keepdims=True)    # Σf²       (TB,1)
    sw = jnp.sum(f * w, axis=1, keepdims=True)    # Σf·w == Σ(f-mean)·w exactly

    f_var = (s2 - s1 * s1 * inv_n) * inv_nm1
    f_var = jnp.maximum(f_var, jnp.float32(0.0))  # guard f32 cancellation
    f_std = jnp.sqrt(f_var)                       # (TB,1)
    cov = sw * inv_n                              # (TB,1)

    denom = f_std * s_std + jnp.float32(0.001)
    ic = -cov / denom                             # exact divide, (TB,1) only

    # mask rows past the true batch size (ragged last tile reads garbage);
    # must stay a select AFTER the computation, not a multiply-by-mask.
    row = lax.broadcasted_iota(jnp.int32, (tb, 1), 0)
    valid = (pl.program_id(0) * tb + row) < batch
    ic = jnp.where(valid, ic, jnp.float32(0.0))

    # lane-dense partial: the tile's Σ(ic) replicated across 128 lanes
    part_ref[...] = jnp.broadcast_to(jnp.sum(ic), (1, 128))


def _is_v7x():
    try:
        return "v7" in jax.devices()[0].device_kind.lower()
    except Exception:  # pragma: no cover - defensive
        return False


def _sublane_pack(dtype):
    # rows per vreg sublane pack: 8 for f32, 16 for bf16, 32 for int8/fp8
    return max(8, 32 // jnp.dtype(dtype).itemsize)


def _pick_block_rows(batch, num_stocks, dtype, is_v7):
    # Size by the f32 working set per tile (conservative for bf16 inputs):
    # ~8 MiB on v5e/v6e (128 MiB physical VMEM), ~6 MiB on v7x (64 MiB).
    tile_bytes = (6 if is_v7 else 8) * 1024 * 1024
    sub = _sublane_pack(dtype)
    cap = max(sub, tile_bytes // (4 * num_stocks))
    tb = min(1024, cap, batch)
    # v7x has 2 TensorCores: make sure the "parallel" batch axis has >= 2
    # tiles so both cores get work (no-op on v5e/v6e).
    if is_v7 and tb >= batch and batch > sub:
        tb = pl.cdiv(batch, 2)
    if tb < batch:
        tb = max(sub, (tb // sub) * sub)   # sublane-pack rule for tiled blocks
    return tb


def icloss(f, num_stocks, *, block_rows=None):
    """Pallas implementation of ICloss.forward(f, num_stocks).

    f: (batch, num_stocks) float array (f32 or bf16 — upcast happens in-kernel).
    Returns a scalar float32.
    """
    assert f.ndim == 2 and f.shape[1] == num_stocks
    batch, n = f.shape
    is_v7 = _is_v7x()
    if block_rows is None:
        block_rows = _pick_block_rows(batch, n, f.dtype, is_v7)
    grid = pl.cdiv(batch, block_rows)

    # constant centered ramp w_j = (N - j) - (N+1)/2, Σw == 0, shape (1, N)
    w = (jnp.float32(n) - jnp.arange(n, dtype=jnp.float32)[None, :]
         - jnp.float32((n + 1) / 2.0))

    kernel = functools.partial(_icloss_kernel, batch=batch)

    partials = pl.pallas_call(
        kernel,
        out_shape=jax.ShapeDtypeStruct((grid, 128), jnp.float32),
        grid=(grid,),
        in_specs=[
            pl.BlockSpec((1, n), lambda i: (0, 0)),           # w: fetched once
            pl.BlockSpec((block_rows, n), lambda i: (i, 0)),  # f: streamed
        ],
        out_specs=pl.BlockSpec((1, 128), lambda i: (i, 0)),
        compiler_params=pltpu.CompilerParams(
            dimension_semantics=("parallel",),  # v7x: shard tiles over 2 TCs
            vmem_limit_bytes=(40 if is_v7 else 64) * 1024 * 1024,
        ),
    )(w, f)

    # tiny final reduction outside the kernel: each tile wrote its partial
    # row-sum replicated across 128 lanes; take lane 0 of each tile.
    return jnp.sum(partials[:, 0]) / jnp.float32(batch)


def _icloss_ref(f, num_stocks):
    # pure-JAX reference for sanity check (f32; PyTorch uses f64 for `sort`)
    f = f.astype(jnp.float32)
    B, N = f.shape
    sort = jnp.arange(N, 0, -1, dtype=jnp.float32)[None, :].repeat(B, axis=0)
    f_mean = f.mean(axis=1, keepdims=True)
    s_mean = sort.mean(axis=1, keepdims=True)
    f_std = jnp.std(f, axis=1, ddof=1)
    s_std = jnp.std(sort, axis=1, ddof=1)
    ic = -jnp.mean((f - f_mean) * (sort - s_mean), axis=1) / (f_std * s_std + 0.001)
    return ic.mean()


if __name__ == "__main__":
    key = jax.random.PRNGKey(0)
    batch, num_stocks = 20, 30
    f = jax.random.normal(key, (batch, num_stocks), dtype=jnp.float32) + 0.5

    ref = _icloss_ref(f, num_stocks)

    # default path (single tile on v5e/v6e, >=2 tiles on v7x)
    out = icloss(f, num_stocks)
    jax.block_until_ready(out)
    assert jnp.allclose(out, ref, atol=2e-5, rtol=2e-5), (out, ref)

    # forced small tile: exercises multi-tile grid + ragged-last-tile masking
    out_tiled = icloss(f, num_stocks, block_rows=8)
    jax.block_until_ready(out_tiled)
    assert jnp.allclose(out_tiled, ref, atol=2e-5, rtol=2e-5), (out_tiled, ref)

    # bf16 input path (16-row sublane pack, in-kernel upcast)
    out_bf16 = icloss(f.astype(jnp.bfloat16), num_stocks)
    jax.block_until_ready(out_bf16)
    assert jnp.allclose(out_bf16, ref, atol=2e-2, rtol=2e-2), (out_bf16, ref)

    print("KERNEL_OK")
</pallas_src>

<mosaic_0001>
module attributes {stable_mosaic.version = 11 : i64} {
  func.func @_icloss_kernel(%arg0: i32, %arg1: memref<1x30xf32, #tpu.memory_space<vmem>>, %arg2: memref<20x30xf32, #tpu.memory_space<vmem>>, %arg3: memref<1x128xf32, #tpu.memory_space<vmem>>) attributes {dimension_semantics = [#tpu.dimension_semantics<parallel>], iteration_bounds = array<i64: 1>, scalar_prefetch = 0 : i64, scratch_operands = 0 : i64, tpu.core_type = #tpu.core_type<tc>, window_params = [{pipeline_mode = #tpu.pipeline_mode<synchronous>, transform_indices = @transform_0, window_bounds = array<i64: 1, 30>}, {transform_indices = @transform_1, window_bounds = array<i64: 20, 30>}, {transform_indices = @transform_2, window_bounds = array<i64: 1, 128>}]} {
    %c0 = arith.constant 0 : index
    %c0_0 = arith.constant 0 : index
    %0 = vector.load %arg2[%c0, %c0_0] : memref<20x30xf32, #tpu.memory_space<vmem>>, vector<20x30xf32>
    %c0_1 = arith.constant 0 : index
    %c0_2 = arith.constant 0 : index
    %1 = vector.load %arg1[%c0_1, %c0_2] : memref<1x30xf32, #tpu.memory_space<vmem>>, vector<1x30xf32>
    %cst = arith.constant dense<0.000000e+00> : vector<20xf32>
    %2 = vector.multi_reduction <add>, %0, %cst [1] : vector<20x30xf32> to vector<20xf32>
    %3 = vector.shape_cast %2 : vector<20xf32> to vector<20x1xf32>
    %4 = arith.mulf %0, %0 : vector<20x30xf32>
    %cst_3 = arith.constant dense<0.000000e+00> : vector<20xf32>
    %5 = vector.multi_reduction <add>, %4, %cst_3 [1] : vector<20x30xf32> to vector<20xf32>
    %6 = vector.shape_cast %5 : vector<20xf32> to vector<20x1xf32>
    %7 = vector.broadcast %1 : vector<1x30xf32> to vector<20x30xf32>
    %8 = arith.mulf %0, %7 : vector<20x30xf32>
    %cst_4 = arith.constant dense<0.000000e+00> : vector<20xf32>
    %9 = vector.multi_reduction <add>, %8, %cst_4 [1] : vector<20x30xf32> to vector<20xf32>
    %10 = vector.shape_cast %9 : vector<20xf32> to vector<20x1xf32>
    %11 = arith.mulf %3, %3 : vector<20x1xf32>
    %cst_5 = arith.constant 0.0333333351 : f32
    %12 = vector.broadcast %cst_5 : f32 to vector<20x1xf32>
    %13 = arith.mulf %11, %12 : vector<20x1xf32>
    %14 = arith.subf %6, %13 : vector<20x1xf32>
    %cst_6 = arith.constant 0.0344827585 : f32
    %15 = vector.broadcast %cst_6 : f32 to vector<20x1xf32>
    %16 = arith.mulf %14, %15 : vector<20x1xf32>
    %cst_7 = arith.constant 0.000000e+00 : f32
    %17 = vector.broadcast %cst_7 : f32 to vector<20x1xf32>
    %18 = arith.maximumf %16, %17 : vector<20x1xf32>
    %19 = math.sqrt %18 : vector<20x1xf32>
    %cst_8 = arith.constant 0.0333333351 : f32
    %20 = vector.broadcast %cst_8 : f32 to vector<20x1xf32>
    %21 = arith.mulf %10, %20 : vector<20x1xf32>
    %cst_9 = arith.constant 8.80340862 : f32
    %22 = vector.broadcast %cst_9 : f32 to vector<20x1xf32>
    %23 = arith.mulf %19, %22 : vector<20x1xf32>
    %cst_10 = arith.constant 1.000000e-03 : f32
    %24 = vector.broadcast %cst_10 : f32 to vector<20x1xf32>
    %25 = arith.addf %23, %24 : vector<20x1xf32>
    %cst_11 = arith.constant 0.000000e+00 : f32
    %26 = vector.broadcast %cst_11 : f32 to vector<20x1xf32>
    %27 = arith.subf %26, %21 : vector<20x1xf32>
    %28 = arith.divf %27, %25 : vector<20x1xf32>
    %29 = tpu.iota {dimensions = array<i32: 0>} : vector<20x1xi32>
    %c20_i32 = arith.constant 20 : i32
    %30 = arith.muli %arg0, %c20_i32 : i32
    %31 = vector.broadcast %30 : i32 to vector<20x1xi32>
    %32 = arith.addi %31, %29 : vector<20x1xi32>
    %c20_i32_12 = arith.constant 20 : i32
    %33 = vector.broadcast %c20_i32_12 : i32 to vector<20x1xi32>
    %34 = arith.cmpi slt, %32, %33 : vector<20x1xi32>
    %cst_13 = arith.constant 0.000000e+00 : f32
    %35 = vector.broadcast %cst_13 : f32 to vector<20x1xf32>
    %36 = arith.select %34, %28, %35 : vector<20x1xi1>, vector<20x1xf32>
    %37 = vector.shape_cast %36 : vector<20x1xf32> to vector<1x20x1xf32>
    %cst_14 = arith.constant dense<0.000000e+00> : vector<1xf32>
    %38 = vector.multi_reduction <add>, %37, %cst_14 [1, 2] : vector<1x20x1xf32> to vector<1xf32>
    %39 = vector.shape_cast %38 : vector<1xf32> to vector<1x1x1xf32>
    %40 = vector.extract %39[0, 0, 0] : f32 from vector<1x1x1xf32>
    %41 = vector.broadcast %40 : f32 to vector<1x128xf32>
    %c0_15 = arith.constant 0 : index
    %c0_16 = arith.constant 0 : index
    %42 = vector.load %arg3[%c0_15, %c0_16] : memref<1x128xf32, #tpu.memory_space<vmem>>, vector<1x128xf32>
    tpu.vector_store %arg3[%c0_15, %c0_16], %41 {strides = array<i32>} : memref<1x128xf32, #tpu.memory_space<vmem>>, vector<1x128xf32>,
    return
  }
  func.func @transform_0(%arg0: i32) -> (i32, i32) {
    %c0_i32 = arith.constant 0 : i32
    %c0_i32_0 = arith.constant 0 : i32
    %c0_i32_1 = arith.constant 0 : i32
    return %c0_i32, %c0_i32_0 : i32, i32
  }
  func.func @transform_1(%arg0: i32) -> (i32, i32) {
    %c0_i32 = arith.constant 0 : i32
    %c0_i32_0 = arith.constant 0 : i32
    return %arg0, %c0_i32 : i32, i32
  }
  func.func @transform_2(%arg0: i32) -> (i32, i32) {
    %c0_i32 = arith.constant 0 : i32
    %c0_i32_0 = arith.constant 0 : i32
    return %arg0, %c0_i32 : i32, i32
  }
}

</mosaic_0001>

<bundles_post_ra>
// kernel: tpu_custom_call.1
= control target key start
LH: loop header
LB: loop body
LE: loop exit
PB: predicated region body
PF: predicated region fallthrough
CT: control target
= control target key end

     0   :  { %7 = vsyncpa [#allocation3], 0  ;;  %s350_s0 = inlined_call_operand.hbm [shape: f32[1,30], index: 0, kind: input, shape index: {}]   ;;  %s351_s1 = inlined_call_operand.hbm [shape: f32[20,30], index: 1, kind: input, shape index: {}]   ;;  %s352_s2 = inlined_call_operand.hbm [shape: f32[1,128], index: 2, kind: output, shape index: {}]  }
   0x1   :  { %8 = vsyncpa [#allocation6], 0 }
   0x2   :  { %9 = vsyncpa [#allocation4], 0  ;;  %s278_s9 = smov [#allocation2]   ;;  %s279_s11 = smov [#allocation5]  }
   0x3   :  { %s16_s10 = sshll.u32 %s278_s9, 4  ;;  %s25_s12 = sshll.u32 %s279_s11, 4  ;;  %s17_s10 = int_to_ptr.vmem [resolvable:$true] %s16_s10  ;;  %s298_s12 = int_to_ptr.vmem [resolvable:$true] %s25_s12 }
   0x4   :  { %s206_s15 = scalar_lea.hbm %s350_s0, 16 }
   0x5   :  { %p207_p0 = scmp.ne.s32.totalorder %s350_s0, %s206_s15  ;;  %p210_p1 = scmp.lt.u32.totalorder %s206_s15, %s350_s0 }
   0x7   :  { %p212_p2 = pnand %p210_p1, %p207_p0 }
   0x9   :  { %215 = shalt.err (!%p212_p2)
}
   0xa   :  { %s216_s20 = scalar_lea.vmem %s17_s10, 16  ;;  %s220_s21 = scalar_lea.vmem %s17_s10, 32 }
   0xb   :  { %p217_p3 = scmp.ne.s32.totalorder %s17_s10, %s216_s20  ;;  %p221_p4 = scmp.lt.s32.totalorder %s17_s10, %s17_s10 }
   0xc   :  { %p222_p5 = scmp.lt.s32.totalorder %s220_s21, %s216_s20 }
   0xe   :  { %p223_p6 = por %p222_p5, %p221_p4 }
  0x10   :  { %p224_p7 = pnand %p223_p6, %p217_p3 }
  0x12   :  { %227 = shalt.err (!%p224_p7)
}
  0x13   :  { %19 = dma.hbm_to_vmem [thread:$0]  %s350_s0, 16, %s17_s10, [#allocation3]  }
  0x14   :  { %s228_s26 = scalar_lea.hbm %s351_s1, 384 }
  0x15   :  { %p229_p8 = scmp.ne.s32.totalorder %s351_s1, %s228_s26  ;;  %p232_p9 = scmp.lt.u32.totalorder %s228_s26, %s351_s1 }
  0x17   :  { %p234_p10 = pnand %p232_p9, %p229_p8 }
  0x19   :  { %237 = shalt.err (!%p234_p10)
}
  0x1a   :  { %s238_s3 = scalar_lea.vmem %s298_s12, 384  ;;  %p243_p12 = scmp.lt.s32.totalorder %s298_s12, %s298_s12 }
  0x1b   :  { %p239_p11 = scmp.ne.s32.totalorder %s298_s12, %s238_s3  ;;  %p244_p13 = scmp.lt.s32.totalorder %s238_s3, %s238_s3 }
  0x1d   :  { %p245_p0 = por %p244_p13, %p243_p12 }
  0x1f   :  { %p246_p1 = pnand %p245_p0, %p239_p11 }
  0x21   :  { %249 = shalt.err (!%p246_p1)
}
  0x22   :  { %s280_s0 = smov 128   ;;  %s281_s4 = smov 8  }
  0x23   :  { %31 = dma.hbm_to_vmem [thread:$0]  %s351_s1, 384, %s298_s12, [#allocation6], %s280_s0, %s280_s0, %s281_s4  }
  0x24   :  { %272 = dma.done.wait [#allocation3], 16  }
  0x25   :  { %273 = vsyncadd [#allocation3], 4294967280 }
  0x26   :  { %274 = dma.done.wait [#allocation6], 384  }
  0x27   :  { %275 = vsyncadd [#allocation6], 4294966912  ;;  %vm49_vm0 = vcmask 240640   ;;  %vm42_vm1 = vcmask 244736   ;;  %v40_v0 = vld [vmem:[#allocation5 + $0x10] sm:$0xf]  ;;  %v137_v61 = vlaneseq }
  0x28   :  { %v38_v1 = vld [vmem:[#allocation5] sm:$0xff]  ;;  %v39_v2 = vld [vmem:[#allocation5 + $0x8] sm:$0xff]  ;;  %v50_v3 = vsel %vm49_vm0, %v40_v0, 0.0  ;;  %v55_v8 = vmul.f32 %v40_v0, %v40_v0  ;;  %v186_v10 = vld [vmem:[#allocation2] ss:$0 sm:$0xff]  ;;  %vm152_vm9 = vcmask 7168  }
  0x29   :  { %v43_v4 = vsel %vm42_vm1, %v38_v1, 0.0  ;;  %v53_v5 = vmul.f32 %v38_v1, %v38_v1  ;;  %51 = vadd.xlane.f32.xlu1 %v50_v3  ;;  %v46_v7 = vsel %vm42_vm1, %v39_v2, 0.0  ;;  %v54_v9 = vmul.f32 %v39_v2, %v39_v2  ;;  %s282_s1 = smov [#allocation7]  }
  0x2a   :  { %44 = vadd.xlane.f32.xlu0 %v43_v4  ;;  %v62_v11 = vsel %vm49_vm0, %v55_v8, 0.0  ;;  %v71_v13 = vmul.f32 %v186_v10, %v38_v1  ;;  %v72_v14 = vmul.f32 %v186_v10, %v39_v2  ;;  %v73_v17 = vmul.f32 %v186_v10, %v40_v0  ;;  %s176_s7 = sshll.u32 %s282_s1, 4  ;;  %s177_s7 = int_to_ptr.vmem [resolvable:$true] %s176_s7 }
  0x2b   :  { %v56_v6 = vsel %vm42_vm1, %v53_v5, 0.0  ;;  %v59_v12 = vsel %vm42_vm1, %v54_v9, 0.0  ;;  %v138_v2 = vshrl.u32 %v137_v61, 7  ;;  %vm156_vm10 = vcmask 3072   ;;  %s250_s9 = scalar_lea.vmem %s177_s7, 16  ;;  %s254_s10 = scalar_lea.vmem %s177_s7, 32 }
  0x2c   :  { %v74_v15 = vsel %vm42_vm1, %v71_v13, 0.0  ;;  %v77_v16 = vsel %vm42_vm1, %v72_v14, 0.0  ;;  %v80_v18 = vsel %vm49_vm0, %v73_v17, 0.0  ;;  %p251_p2 = scmp.ne.s32.totalorder %s177_s7, %s250_s9  ;;  %p255_p3 = scmp.lt.s32.totalorder %s177_s7, %s177_s7 }
  0x2d   :  { %57 = vadd.xlane.f32.xlu1 %v56_v6  ;;  %v140_v6 = vadd.s32 16, %v138_v2  ;;  %p256_p4 = scmp.lt.s32.totalorder %s254_s10, %s250_s9 }
  0x2e   :  { %47 = vadd.xlane.f32.xlu0 %v46_v7 }
  0x2f   :  { %vm148_vm8 = vcmp.lt.s32.totalorder %v140_v6, 20  ;;  %p257_p5 = por %p256_p4, %p255_p3 }
  0x31   :  { %63 = vadd.xlane.f32.xlu1 %v62_v11  ;;  %p258_p6 = pnand %p257_p5, %p251_p2 }
  0x32   :  { %60 = vadd.xlane.f32.xlu0 %v59_v12 }
  0x35   :  { %78 = vadd.xlane.f32.xlu1 %v77_v16 }
  0x36   :  { %75 = vadd.xlane.f32.xlu0 %v74_v15 }
  0x3a   :  { %81 = vadd.xlane.f32.xlu0 %v80_v18 }
  0xb6   :  { %v52_v19 = vpop.xlane.xlu1 %51 }
  0xb7   :  { %v45_v20 = vpop.xlane.xlu0 %44  ;;  %v85_v22 = vmul.f32 %v52_v19, %v52_v19 }
  0xb8   :  { %v83_v21 = vmul.f32 %v45_v20, %v45_v20 }
  0xb9   :  { %v88_v28 = vmul.f32 0.033333335, %v85_v22 }
  0xba   :  { %v86_v23 = vmul.f32 0.033333335, %v83_v21  ;;  %v58_v24 = vpop.xlane.xlu1 %57 }
  0xbb   :  { %v48_v25 = vpop.xlane.xlu0 %47 }
  0xbc   :  { %v89_v26 = vsub.f32 %v58_v24, %v86_v23  ;;  %v84_v27 = vmul.f32 %v48_v25, %v48_v25 }
  0xbe   :  { %v92_v29 = vmul.f32 0.03448276, %v89_v26  ;;  %v87_v30 = vmul.f32 0.033333335, %v84_v27  ;;  %v64_v31 = vpop.xlane.xlu1 %63 }
  0xbf   :  { %v61_v32 = vpop.xlane.xlu0 %60  ;;  %v91_v34 = vsub.f32 %v64_v31, %v88_v28 }
  0xc0   :  { %v95_v33 = vmax.f32 %v92_v29, 0.0  ;;  %v90_v35 = vsub.f32 %v61_v32, %v87_v30 }
  0xc1   :  { %v94_v36 = vmul.f32 0.03448276, %v91_v34 }
  0xc2   :  { %194 = vrsqrt.f32 %v95_v33  ;;  %v93_v37 = vmul.f32 0.03448276, %v90_v35  ;;  %vm100_vm2 = vcmp.eq.f32.partialorder %v95_v33, inf  ;;  %v103_v42 = vand.u32 2147483648, %v95_v33  ;;  %v79_v0 = vpop.xlane.xlu1 %78 }
  0xc3   :  { %v97_v38 = vmax.f32 %v94_v36, 0.0  ;;  %vm102_vm3 = vcmp.eq.f32.partialorder %v95_v33, 0.0  ;;  %v76_v53 = vpop.xlane.xlu0 %75  ;;  %v120_v4 = vmul.f32 0.033333335, %v79_v0 }
  0xc4   :  { %v96_v39 = vmax.f32 %v93_v37, 0.0  ;;  %v119_v1 = vmul.f32 0.033333335, %v76_v53 }
  0xc5   :  { %196 = vrsqrt.f32 %v97_v38  ;;  %vm114_vm5 = vcmp.eq.f32.partialorder %v97_v38, inf  ;;  %v117_v50 = vand.u32 2147483648, %v97_v38  ;;  %vm116_vm6 = vcmp.eq.f32.partialorder %v97_v38, 0.0 }
  0xc6   :  { %198 = vrsqrt.f32 %v96_v39  ;;  %vm107_vm4 = vcmp.eq.f32.partialorder %v96_v39, inf  ;;  %v110_v51 = vand.u32 2147483648, %v96_v39  ;;  %vm109_vm7 = vcmp.eq.f32.partialorder %v96_v39, 0.0 }
  0xc7   :  { %v82_v63 = vpop.xlane.xlu0 %81  ;;  %v128_v5 = vsub.f32 0.0, %v119_v1  ;;  %v129_v9 = vsub.f32 0.0, %v120_v4 }
  0xc8   :  { %v121_v3 = vmul.f32 0.033333335, %v82_v63 }
  0xca   :  { %v130_v8 = vsub.f32 0.0, %v121_v3 }
  0xcc   :  { %v195_v40 = vpop.eup %194 }
  0xcd   :  { %v99_v41 = vmul.f32 %v195_v40, %v95_v33 }
  0xcf   :  { %v101_v43 = vsel %vm100_vm2, %v95_v33, %v99_v41  ;;  %v197_v44 = vpop.eup %196 }
  0xd0   :  { %v104_v45 = vsel %vm102_vm3, %v103_v42, %v101_v43  ;;  %v199_v46 = vpop.eup %198  ;;  %v113_v47 = vmul.f32 %v197_v44, %v97_v38 }
  0xd1   :  { %v122_v48 = vmul.f32 8.803409, %v104_v45  ;;  %v106_v49 = vmul.f32 %v199_v46, %v96_v39 }
  0xd2   :  { %v115_v54 = vsel %vm114_vm5, %v97_v38, %v113_v47 }
  0xd3   :  { %v125_v52 = vadd.f32 0.001, %v122_v48  ;;  %v108_v55 = vsel %vm107_vm4, %v96_v39, %v106_v49  ;;  %v118_v56 = vsel %vm116_vm6, %v117_v50, %v115_v54 }
  0xd4   :  { %v111_v57 = vsel %vm109_vm7, %v110_v51, %v108_v55  ;;  %v124_v58 = vmul.f32 8.803409, %v118_v56 }
  0xd5   :  { %200 = vrcp.f32 %v125_v52  ;;  %v123_v59 = vmul.f32 8.803409, %v111_v57 }
  0xd6   :  { %v127_v60 = vadd.f32 0.001, %v124_v58 }
  0xd7   :  { %v126_v62 = vadd.f32 0.001, %v123_v59 }
  0xd8   :  { %202 = vrcp.f32 %v127_v60 }
  0xd9   :  { %204 = vrcp.f32 %v126_v62 }
  0xdf   :  { %v201_v7 = vpop.eup %200 }
  0xe0   :  { %v132_v11 = vmul.f32 %v201_v7, %v128_v5 }
  0xe2   :  { %v203_v10 = vpop.eup %202  ;;  %v153_v16 = vsel %vm152_vm9, %v132_v11, 0.0 }
  0xe3   :  { %v205_v12 = vpop.eup %204  ;;  %v136_v13 = vmul.f32 %v203_v10, %v130_v8 }
  0xe4   :  { %v134_v14 = vmul.f32 %v205_v12, %v129_v9 }
  0xe5   :  { %v151_v15 = vsel %vm148_vm8, %v136_v13, 0.0 }
  0xe6   :  { %v154_v17 = vsel %vm152_vm9, %v134_v14, 0.0  ;;  %v157_v18 = vsel %vm156_vm10, %v151_v15, 0.0 }
  0xe7   :  { %v155_v19 = vadd.f32 %v154_v17, %v153_v16 }
  0xe9   :  { %v158_v20 = vadd.f32 %v157_v18, %v155_v19 }
  0xeb   :  { %159 = vadd.xlane.f32.xlu1 %v158_v20 }
 0x178   :  { %v160_v21 = vpop.xlane.xlu1 %159 }
 0x179   :  { %v161_v22 = vrot.slane %v160_v21, 4 }
 0x17b   :  { %v162_v23 = vadd.f32 %v161_v22, %v160_v21 }
 0x17d   :  { %v163_v24 = vrot.slane %v162_v23, 2 }
 0x17f   :  { %v164_v25 = vadd.f32 %v163_v24, %v162_v23 }
 0x181   :  { %v165_v26 = vrot.slane %v164_v25, 1 }
 0x183   :  { %v166_v27 = vadd.f32 %v165_v26, %v164_v25 }
 0x185   :  { %187 = vpush %v166_v27 }
 0x1b6   :  { %s188_s8 = spop %187 }
 0x1b7   :  { %v168_v28 = vstv %s188_s8 }
 0x1b8   :  { %169 = vst [vmem:[#allocation7] sm:$0x1] %v168_v28 }
 0x1b9   :  { %261 = shalt.err (!%p258_p6)
}
 0x1ba   :  { %s262_s13 = scalar_lea.hbm %s352_s2, 16 }
 0x1bb   :  { %p263_p7 = scmp.ne.s32.totalorder %s352_s2, %s262_s13  ;;  %p266_p8 = scmp.lt.u32.totalorder %s262_s13, %s352_s2 }
 0x1bd   :  { %p268_p9 = pnand %p266_p8, %p263_p7 }
 0x1bf   :  { %271 = shalt.err (!%p268_p9)
}
 0x1c0   :  { %179 = dma.vmem_to_hbm [thread:$0]  %s177_s7, 16, %s352_s2, [#allocation4]  }
 0x1c1   :  { %276 = dma.done.wait [#allocation4], 16  }
 0x1c2   :  { %277 = vsyncadd [#allocation4], 4294967280 }
 0x1c3   :  { %183 = vsyncpa [#allocation3], 1 }
 0x1c4   :  { %184 = vsyncpa [#allocation6], 1 }
 0x1c5   :  { %185 = vsyncpa [#allocation4], 1 }

</bundles_post_ra>
